<compile_context>
chip_gen: v6e
topology: v6e:2x2x1
jax: 0.10.0
libtpu: 0.0.40
codegen_flags: <defaults>
</compile_context>

<pallas_src>
import jax
import jax.numpy as jnp
from jax.experimental import pallas as pl
from jax.experimental.pallas import tpu as pltpu


def gc_kernel(x_ref, watt_ref, batt_ref, w1t_ref, b1_ref,
              lnw_ref, lnb_ref, w2_ref, b2_ref, out_ref):
    x = x_ref[...].astype(jnp.float32)                        # (Bt, C, HW)

    # --- attention logits: 1x1 conv C -> 1 (VPU multiply + sublane reduce) ---
    w3 = watt_ref[...][None, :, :]                            # (1, C, 1)
    logits = jnp.sum(w3 * x, axis=1, keepdims=True) + batt_ref[0]   # (Bt, 1, HW)

    # --- softmax numerator over HW (normalization deferred past the pooling) ---
    m = jnp.max(logits, axis=2, keepdims=True)                # (Bt, 1, 1)
    e = jnp.exp(logits - m)                                   # (Bt, 1, HW)
    denom = jnp.sum(e, axis=2, keepdims=True)                 # (Bt, 1, 1)

    # --- global-context pooling: lane reduce of x * exp-numerator ---
    ctx = jnp.sum(x * e, axis=2, keepdims=True)               # (Bt, C, 1)
    ctx = ctx * pl.reciprocal(denom, approx=False)            # exact, applied once

    # --- transform: 1x1 conv -> LayerNorm([mid,1,1]) -> ReLU -> 1x1 conv ---
    # Contractions as broadcast-multiply + keepdims reduce; channel stays in
    # sublanes and mid stays in lanes, so no reshape/transpose is needed.
    # TODO(synk): for very large C*mid, switch these two contractions to MXU dots.
    h = jnp.sum(w1t_ref[...][None, :, :] * ctx, axis=1, keepdims=True) \
        + b1_ref[...]                                         # (Bt, 1, mid)
    mu = jnp.mean(h, axis=2, keepdims=True)
    var = jnp.mean((h - mu) ** 2, axis=2, keepdims=True)
    hn = (h - mu) * jax.lax.rsqrt(var + 1e-5)
    hn = hn * lnw_ref[...] + lnb_ref[...]
    hn = jnp.maximum(hn, 0.0)
    t = jnp.sum(w2_ref[...][None, :, :] * hn, axis=2, keepdims=True) \
        + b2_ref[...]                                         # (Bt, C, 1)

    # --- residual: broadcast add over spatial lanes ---
    out_ref[...] = (x + t).astype(out_ref.dtype)


def _vmem_budget_bytes():
    """~75% of this generation's physical VMEM (128 MiB v5e/v6e, 64 MiB v7x)."""
    try:
        phys = int(pltpu.get_tpu_info().vmem_capacity_bytes)
    except Exception:
        phys = 64 << 20                       # conservative fallback (v7x physical)
    return (phys * 3) // 4


def _pick_bt(B, per_sample_bytes, vmem_budget):
    """Batch rows per grid step: ~1-2 MiB DMA blocks, >=2 grid steps, VMEM-safe."""
    target = 2 << 20
    cap = max(1, target // max(per_sample_bytes, 1))
    if B >= 2:
        cap = min(cap, B // 2)                # keep >= 2 steps for dual-TC parts
    cap = max(1, min(cap, B))
    # live set per step ~ 2 input bufs + 2 output bufs + ~3 body temporaries
    while cap > 1 and 7 * cap * per_sample_bytes > vmem_budget:
        cap -= 1
    for d in range(cap, 0, -1):
        if B % d == 0:
            return d
    return 1


@jax.jit
def global_context_layer(x, params):
    B, C, H, W = x.shape
    HW = H * W
    mid = params["w1t"].shape[1]

    # No host-side padding / slicing: full-extent (C, HW) block, even if HW % 128 != 0.
    x3 = x.reshape(B, C, HW)
    per_sample = C * HW * x3.dtype.itemsize

    vmem_budget = _vmem_budget_bytes()
    Bt = _pick_bt(B, per_sample, vmem_budget)
    grid_steps = B // Bt

    # Deeper input pipeline when blocks are small and the grid is long (v7x HBM).
    deep_pipeline = (grid_steps >= 3
                     and Bt * per_sample <= (2 << 20)
                     and 8 * Bt * per_sample + (4 << 20) <= vmem_budget)

    needed = (8 if deep_pipeline else 7) * Bt * per_sample + (4 << 20)
    vmem_limit = int(min(max(needed, 32 << 20), vmem_budget))
    # TODO(synk): if a single sample (7 * per_sample) exceeds vmem_budget, split HW
    # into an "arbitrary" grid axis with online (max, exp-sum, pooled-ctx)
    # accumulation plus a second broadcast-add pass for the residual.

    if deep_pipeline:
        x_spec = pl.BlockSpec((Bt, C, HW), lambda b: (b, 0, 0),
                              pipeline_mode=pl.Buffered(3))
    else:
        x_spec = pl.BlockSpec((Bt, C, HW), lambda b: (b, 0, 0))

    out = pl.pallas_call(
        gc_kernel,
        out_shape=jax.ShapeDtypeStruct((B, C, HW), x.dtype),
        grid_spec=pltpu.PrefetchScalarGridSpec(
            num_scalar_prefetch=0,
            grid=(grid_steps,),
            in_specs=[
                x_spec,                                                   # x
                pl.BlockSpec((C, 1), lambda b: (0, 0)),                   # attention weight (C,1)
                pl.BlockSpec(memory_space=pltpu.MemorySpace.SMEM),        # attention bias scalar
                pl.BlockSpec((C, mid), lambda b: (0, 0)),                 # conv1 weight^T  (C,mid)
                pl.BlockSpec((1, 1, mid), lambda b: (0, 0, 0)),           # conv1 bias
                pl.BlockSpec((1, 1, mid), lambda b: (0, 0, 0)),           # LayerNorm weight
                pl.BlockSpec((1, 1, mid), lambda b: (0, 0, 0)),           # LayerNorm bias
                pl.BlockSpec((C, mid), lambda b: (0, 0)),                 # conv2 weight    (C,mid)
                pl.BlockSpec((1, C, 1), lambda b: (0, 0, 0)),             # conv2 bias
            ],
            out_specs=pl.BlockSpec((Bt, C, HW), lambda b: (b, 0, 0)),
        ),
        compiler_params=pltpu.CompilerParams(
            dimension_semantics=("parallel",),
            vmem_limit_bytes=vmem_limit,
        ),
    )(x3, params["w_att"], params["b_att"], params["w1t"], params["b1"],
      params["ln_w"], params["ln_b"], params["w2"], params["b2"])

    return out.reshape(B, C, H, W)


def init_params(key, C, r=2):
    mid = C // r
    ks = jax.random.split(key, 8)
    rnd = lambda k, shape, scale: jax.random.normal(k, shape, jnp.float32) * scale
    return dict(
        w_att=rnd(ks[0], (C, 1), 0.5),          # Conv2d(C,1,1).weight -> (C,1)
        b_att=rnd(ks[1], (1,), 0.1),            # Conv2d(C,1,1).bias
        w1t=rnd(ks[2], (C, mid), 0.5),          # Conv2d(C,mid,1).weight^T -> (C,mid)
        b1=rnd(ks[3], (1, 1, mid), 0.1),
        ln_w=1.0 + rnd(ks[4], (1, 1, mid), 0.1),  # LayerNorm([mid,1,1]).weight
        ln_b=rnd(ks[5], (1, 1, mid), 0.1),
        w2=rnd(ks[6], (C, mid), 0.5),           # Conv2d(mid,C,1).weight -> (C,mid)
        b2=rnd(ks[7], (1, C, 1), 0.1),
    )


def reference(x, params):
    """Pure-JAX mirror of the PyTorch forward (correctness check)."""
    B, C, H, W = x.shape
    logits = jnp.einsum("bchw,c->bhw", x, params["w_att"][:, 0]) + params["b_att"][0]
    p = jax.nn.softmax(logits.reshape(B, -1), axis=1).reshape(B, H, W)
    ctx = jnp.einsum("bchw,bhw->bc", x, p)                          # (B, C)
    h = ctx @ params["w1t"] + params["b1"][0, 0]                    # (B, mid)
    mu = h.mean(axis=1, keepdims=True)
    var = ((h - mu) ** 2).mean(axis=1, keepdims=True)
    hn = (h - mu) / jnp.sqrt(var + 1e-5) * params["ln_w"][0, 0] + params["ln_b"][0, 0]
    hn = jnp.maximum(hn, 0.0)
    t = hn @ params["w2"].T + params["b2"][0, :, 0]                 # (B, C)
    return x + t[:, :, None, None]


if __name__ == "__main__":
    key = jax.random.PRNGKey(0)
    kx, kx2, kp = jax.random.split(key, 3)

    # Case 1: 128-aligned spatial dim (H*W = 256) — lane-dense path.
    B, C, H, W = 2, 4, 16, 16          # in_features=4, r=2 -> mid_features=2
    x = jax.random.normal(kx, (B, C, H, W), jnp.float32)
    params = init_params(kp, C, r=2)

    out = jax.block_until_ready(global_context_layer(x, params))
    ref = reference(x, params)
    err = float(jnp.max(jnp.abs(out - ref)))
    assert jnp.allclose(out, ref, atol=1e-4, rtol=1e-4), f"max abs err = {err}"

    # Case 2: non-128-aligned spatial dim (H*W = 100) — full-extent block,
    # no host pad/slice, masked stores inside the kernel.
    Hb, Wb = 10, 10
    xb = jax.random.normal(kx2, (B, C, Hb, Wb), jnp.float32)
    outb = jax.block_until_ready(global_context_layer(xb, params))
    refb = reference(xb, params)
    errb = float(jnp.max(jnp.abs(outb - refb)))
    assert jnp.allclose(outb, refb, atol=1e-4, rtol=1e-4), f"max abs err (unaligned) = {errb}"

    print("KERNEL_OK")
</pallas_src>

<mosaic_0001>
module attributes {stable_mosaic.version = 11 : i64} {
  func.func @gc_kernel(%arg0: i32, %arg1: memref<1x4x256xf32, #tpu.memory_space<vmem>>, %arg2: memref<4x1xf32, #tpu.memory_space<vmem>>, %arg3: memref<1xf32, #tpu.memory_space<smem>>, %arg4: memref<4x2xf32, #tpu.memory_space<vmem>>, %arg5: memref<1x1x2xf32, #tpu.memory_space<vmem>>, %arg6: memref<1x1x2xf32, #tpu.memory_space<vmem>>, %arg7: memref<1x1x2xf32, #tpu.memory_space<vmem>>, %arg8: memref<4x2xf32, #tpu.memory_space<vmem>>, %arg9: memref<1x4x1xf32, #tpu.memory_space<vmem>>, %arg10: memref<1x4x256xf32, #tpu.memory_space<vmem>>) attributes {dimension_semantics = [#tpu.dimension_semantics<parallel>], iteration_bounds = array<i64: 2>, scalar_prefetch = 0 : i64, scratch_operands = 0 : i64, tpu.core_type = #tpu.core_type<tc>, window_params = [{transform_indices = @transform_0, window_bounds = array<i64: 1, 4, 256>}, {pipeline_mode = #tpu.pipeline_mode<synchronous>, transform_indices = @transform_1, window_bounds = array<i64: 4, 1>}, {transform_indices = @transform_2, window_bounds = array<i64: 1>}, {pipeline_mode = #tpu.pipeline_mode<synchronous>, transform_indices = @transform_3, window_bounds = array<i64: 4, 2>}, {pipeline_mode = #tpu.pipeline_mode<synchronous>, transform_indices = @transform_4, window_bounds = array<i64: 1, 1, 2>}, {pipeline_mode = #tpu.pipeline_mode<synchronous>, transform_indices = @transform_5, window_bounds = array<i64: 1, 1, 2>}, {pipeline_mode = #tpu.pipeline_mode<synchronous>, transform_indices = @transform_6, window_bounds = array<i64: 1, 1, 2>}, {pipeline_mode = #tpu.pipeline_mode<synchronous>, transform_indices = @transform_7, window_bounds = array<i64: 4, 2>}, {pipeline_mode = #tpu.pipeline_mode<synchronous>, transform_indices = @transform_8, window_bounds = array<i64: 1, 4, 1>}, {transform_indices = @transform_9, window_bounds = array<i64: 1, 4, 256>}]} {
    %c0 = arith.constant 0 : index
    %c0_0 = arith.constant 0 : index
    %c0_1 = arith.constant 0 : index
    %0 = vector.load %arg1[%c0, %c0_0, %c0_1] : memref<1x4x256xf32, #tpu.memory_space<vmem>>, vector<1x4x256xf32>
    %c0_2 = arith.constant 0 : index
    %c0_3 = arith.constant 0 : index
    %1 = vector.load %arg2[%c0_2, %c0_3] : memref<4x1xf32, #tpu.memory_space<vmem>>, vector<4x1xf32>
    %2 = vector.shape_cast %1 : vector<4x1xf32> to vector<1x4x1xf32>
    %3 = vector.broadcast %2 : vector<1x4x1xf32> to vector<1x4x256xf32>
    %4 = arith.mulf %3, %0 : vector<1x4x256xf32>
    %cst = arith.constant dense<0.000000e+00> : vector<1x256xf32>
    %5 = vector.multi_reduction <add>, %4, %cst [1] : vector<1x4x256xf32> to vector<1x256xf32>
    %6 = vector.shape_cast %5 : vector<1x256xf32> to vector<1x1x256xf32>
    %c0_4 = arith.constant 0 : index
    %7 = memref.load %arg3[%c0_4] : memref<1xf32, #tpu.memory_space<smem>>
    %8 = vector.broadcast %7 : f32 to vector<1x1x256xf32>
    %9 = arith.addf %6, %8 : vector<1x1x256xf32>
    %cst_5 = arith.constant dense<0xFF800000> : vector<1x1xf32>
    %10 = vector.multi_reduction <maximumf>, %9, %cst_5 [2] : vector<1x1x256xf32> to vector<1x1xf32>
    %11 = vector.shape_cast %10 : vector<1x1xf32> to vector<1x1x1xf32>
    %12 = vector.broadcast %11 : vector<1x1x1xf32> to vector<1x1x256xf32>
    %13 = arith.subf %9, %12 : vector<1x1x256xf32>
    %14 = math.exp %13 : vector<1x1x256xf32>
    %cst_6 = arith.constant dense<0.000000e+00> : vector<1x1xf32>
    %15 = vector.multi_reduction <add>, %14, %cst_6 [2] : vector<1x1x256xf32> to vector<1x1xf32>
    %16 = vector.shape_cast %15 : vector<1x1xf32> to vector<1x1x1xf32>
    %17 = vector.broadcast %14 : vector<1x1x256xf32> to vector<1x4x256xf32>
    %18 = arith.mulf %0, %17 : vector<1x4x256xf32>
    %cst_7 = arith.constant dense<0.000000e+00> : vector<1x4xf32>
    %19 = vector.multi_reduction <add>, %18, %cst_7 [2] : vector<1x4x256xf32> to vector<1x4xf32>
    %20 = vector.shape_cast %19 : vector<1x4xf32> to vector<1x4x1xf32>
    %21 = tpu.reciprocal %16 : vector<1x1x1xf32> -> vector<1x1x1xf32>
    %22 = vector.broadcast %21 : vector<1x1x1xf32> to vector<1x4x1xf32>
    %23 = arith.mulf %20, %22 : vector<1x4x1xf32>
    %c0_8 = arith.constant 0 : index
    %c0_9 = arith.constant 0 : index
    %24 = vector.load %arg4[%c0_8, %c0_9] : memref<4x2xf32, #tpu.memory_space<vmem>>, vector<4x2xf32>
    %25 = vector.shape_cast %24 : vector<4x2xf32> to vector<1x4x2xf32>
    %26 = vector.broadcast %23 : vector<1x4x1xf32> to vector<1x4x2xf32>
    %27 = arith.mulf %25, %26 : vector<1x4x2xf32>
    %cst_10 = arith.constant dense<0.000000e+00> : vector<1x2xf32>
    %28 = vector.multi_reduction <add>, %27, %cst_10 [1] : vector<1x4x2xf32> to vector<1x2xf32>
    %29 = vector.shape_cast %28 : vector<1x2xf32> to vector<1x1x2xf32>
    %c0_11 = arith.constant 0 : index
    %c0_12 = arith.constant 0 : index
    %c0_13 = arith.constant 0 : index
    %30 = vector.load %arg5[%c0_11, %c0_12, %c0_13] : memref<1x1x2xf32, #tpu.memory_space<vmem>>, vector<1x1x2xf32>
    %31 = arith.addf %29, %30 : vector<1x1x2xf32>
    %cst_14 = arith.constant dense<0.000000e+00> : vector<1x1xf32>
    %32 = vector.multi_reduction <add>, %31, %cst_14 [2] : vector<1x1x2xf32> to vector<1x1xf32>
    %33 = vector.shape_cast %32 : vector<1x1xf32> to vector<1x1x1xf32>
    %cst_15 = arith.constant 2.000000e+00 : f32
    %34 = vector.broadcast %cst_15 : f32 to vector<1x1x1xf32>
    %35 = arith.divf %33, %34 : vector<1x1x1xf32>
    %36 = vector.broadcast %35 : vector<1x1x1xf32> to vector<1x1x2xf32>
    %37 = arith.subf %31, %36 : vector<1x1x2xf32>
    %38 = arith.mulf %37, %37 : vector<1x1x2xf32>
    %cst_16 = arith.constant dense<0.000000e+00> : vector<1x1xf32>
    %39 = vector.multi_reduction <add>, %38, %cst_16 [2] : vector<1x1x2xf32> to vector<1x1xf32>
    %40 = vector.shape_cast %39 : vector<1x1xf32> to vector<1x1x1xf32>
    %cst_17 = arith.constant 2.000000e+00 : f32
    %41 = vector.broadcast %cst_17 : f32 to vector<1x1x1xf32>
    %42 = arith.divf %40, %41 : vector<1x1x1xf32>
    %43 = vector.broadcast %35 : vector<1x1x1xf32> to vector<1x1x2xf32>
    %44 = arith.subf %31, %43 : vector<1x1x2xf32>
    %cst_18 = arith.constant 9.99999974E-6 : f32
    %45 = vector.broadcast %cst_18 : f32 to vector<1x1x1xf32>
    %46 = arith.addf %42, %45 : vector<1x1x1xf32>
    %47 = math.rsqrt %46 : vector<1x1x1xf32>
    %48 = vector.broadcast %47 : vector<1x1x1xf32> to vector<1x1x2xf32>
    %49 = arith.mulf %44, %48 : vector<1x1x2xf32>
    %c0_19 = arith.constant 0 : index
    %c0_20 = arith.constant 0 : index
    %c0_21 = arith.constant 0 : index
    %50 = vector.load %arg6[%c0_19, %c0_20, %c0_21] : memref<1x1x2xf32, #tpu.memory_space<vmem>>, vector<1x1x2xf32>
    %51 = arith.mulf %49, %50 : vector<1x1x2xf32>
    %c0_22 = arith.constant 0 : index
    %c0_23 = arith.constant 0 : index
    %c0_24 = arith.constant 0 : index
    %52 = vector.load %arg7[%c0_22, %c0_23, %c0_24] : memref<1x1x2xf32, #tpu.memory_space<vmem>>, vector<1x1x2xf32>
    %53 = arith.addf %51, %52 : vector<1x1x2xf32>
    %cst_25 = arith.constant 0.000000e+00 : f32
    %54 = vector.broadcast %cst_25 : f32 to vector<1x1x2xf32>
    %55 = arith.maximumf %53, %54 : vector<1x1x2xf32>
    %c0_26 = arith.constant 0 : index
    %c0_27 = arith.constant 0 : index
    %56 = vector.load %arg8[%c0_26, %c0_27] : memref<4x2xf32, #tpu.memory_space<vmem>>, vector<4x2xf32>
    %57 = vector.shape_cast %56 : vector<4x2xf32> to vector<1x4x2xf32>
    %58 = vector.broadcast %55 : vector<1x1x2xf32> to vector<1x4x2xf32>
    %59 = arith.mulf %57, %58 : vector<1x4x2xf32>
    %cst_28 = arith.constant dense<0.000000e+00> : vector<1x4xf32>
    %60 = vector.multi_reduction <add>, %59, %cst_28 [2] : vector<1x4x2xf32> to vector<1x4xf32>
    %61 = vector.shape_cast %60 : vector<1x4xf32> to vector<1x4x1xf32>
    %c0_29 = arith.constant 0 : index
    %c0_30 = arith.constant 0 : index
    %c0_31 = arith.constant 0 : index
    %62 = vector.load %arg9[%c0_29, %c0_30, %c0_31] : memref<1x4x1xf32, #tpu.memory_space<vmem>>, vector<1x4x1xf32>
    %63 = arith.addf %61, %62 : vector<1x4x1xf32>
    %64 = vector.broadcast %63 : vector<1x4x1xf32> to vector<1x4x256xf32>
    %65 = arith.addf %0, %64 : vector<1x4x256xf32>
    %c0_32 = arith.constant 0 : index
    %c0_33 = arith.constant 0 : index
    %c0_34 = arith.constant 0 : index
    %66 = vector.load %arg10[%c0_32, %c0_33, %c0_34] : memref<1x4x256xf32, #tpu.memory_space<vmem>>, vector<1x4x256xf32>
    tpu.vector_store %arg10[%c0_32, %c0_33, %c0_34], %65 {strides = array<i32>} : memref<1x4x256xf32, #tpu.memory_space<vmem>>, vector<1x4x256xf32>,
    return
  }
  func.func @transform_0(%arg0: i32) -> (i32, i32, i32) {
    %c0_i32 = arith.constant 0 : i32
    %c0_i32_0 = arith.constant 0 : i32
    %c0_i32_1 = arith.constant 0 : i32
    return %arg0, %c0_i32, %c0_i32_0 : i32, i32, i32
  }
  func.func @transform_1(%arg0: i32) -> (i32, i32) {
    %c0_i32 = arith.constant 0 : i32
    %c0_i32_0 = arith.constant 0 : i32
    %c0_i32_1 = arith.constant 0 : i32
    return %c0_i32, %c0_i32_0 : i32, i32
  }
  func.func @transform_2(%arg0: i32) -> i32 {
    %c0_i32 = arith.constant 0 : i32
    %c0_i32_0 = arith.constant 0 : i32
    return %c0_i32 : i32
  }
  func.func @transform_3(%arg0: i32) -> (i32, i32) {
    %c0_i32 = arith.constant 0 : i32
    %c0_i32_0 = arith.constant 0 : i32
    %c0_i32_1 = arith.constant 0 : i32
    return %c0_i32, %c0_i32_0 : i32, i32
  }
  func.func @transform_4(%arg0: i32) -> (i32, i32, i32) {
    %c0_i32 = arith.constant 0 : i32
    %c0_i32_0 = arith.constant 0 : i32
    %c0_i32_1 = arith.constant 0 : i32
    %c0_i32_2 = arith.constant 0 : i32
    return %c0_i32, %c0_i32_0, %c0_i32_1 : i32, i32, i32
  }
  func.func @transform_5(%arg0: i32) -> (i32, i32, i32) {
    %c0_i32 = arith.constant 0 : i32
    %c0_i32_0 = arith.constant 0 : i32
    %c0_i32_1 = arith.constant 0 : i32
    %c0_i32_2 = arith.constant 0 : i32
    return %c0_i32, %c0_i32_0, %c0_i32_1 : i32, i32, i32
  }
  func.func @transform_6(%arg0: i32) -> (i32, i32, i32) {
    %c0_i32 = arith.constant 0 : i32
    %c0_i32_0 = arith.constant 0 : i32
    %c0_i32_1 = arith.constant 0 : i32
    %c0_i32_2 = arith.constant 0 : i32
    return %c0_i32, %c0_i32_0, %c0_i32_1 : i32, i32, i32
  }
  func.func @transform_7(%arg0: i32) -> (i32, i32) {
    %c0_i32 = arith.constant 0 : i32
    %c0_i32_0 = arith.constant 0 : i32
    %c0_i32_1 = arith.constant 0 : i32
    return %c0_i32, %c0_i32_0 : i32, i32
  }
  func.func @transform_8(%arg0: i32) -> (i32, i32, i32) {
    %c0_i32 = arith.constant 0 : i32
    %c0_i32_0 = arith.constant 0 : i32
    %c0_i32_1 = arith.constant 0 : i32
    %c0_i32_2 = arith.constant 0 : i32
    return %c0_i32, %c0_i32_0, %c0_i32_1 : i32, i32, i32
  }
  func.func @transform_9(%arg0: i32) -> (i32, i32, i32) {
    %c0_i32 = arith.constant 0 : i32
    %c0_i32_0 = arith.constant 0 : i32
    %c0_i32_1 = arith.constant 0 : i32
    return %arg0, %c0_i32, %c0_i32_0 : i32, i32, i32
  }
}

</mosaic_0001>

<bundles_post_ra>
// kernel: global_context_layer.1
= control target key start
LH: loop header
LB: loop body
LE: loop exit
PB: predicated region body
PF: predicated region fallthrough
CT: control target
= control target key end

     0   :  { %s601_s11 = smov 0   ;;  %s659_s0 = inlined_call_operand.vmem [shape: f32[2,4,256], index: 0, kind: input, shape index: {}]   ;;  %s660_s1 = inlined_call_operand.vmem [shape: f32[4,1], index: 1, kind: input, shape index: {}]   ;;  %s661_s2 = inlined_call_operand.<no memory space> [shape: f32[1], index: 2, kind: input, shape index: {}]   ;;  %s662_s3 = inlined_call_operand.vmem [shape: f32[4,2], index: 3, kind: input, shape index: {}]   ;;  %s663_s4 = inlined_call_operand.vmem [shape: f32[1,1,2], index: 4, kind: input, shape index: {}]   ;;  %s664_s5 = inlined_call_operand.vmem [shape: f32[1,1,2], index: 5, kind: input, shape index: {}]   ;;  %s665_s6 = inlined_call_operand.vmem [shape: f32[1,1,2], index: 6, kind: input, shape index: {}]   ;;  %s666_s7 = inlined_call_operand.vmem [shape: f32[4,2], index: 7, kind: input, shape index: {}]   ;;  %s667_s8 = inlined_call_operand.vmem [shape: f32[1,4,1], index: 8, kind: input, shape index: {}]   ;;  %s668_s9 = inlined_call_operand.vmem [shape: f32[2,4,256], index: 9, kind: output, shape index: {}]  }
   0x1   :  { %14 = sst [smem:[#allocation2]] %s661_s2 }
   0x2 LB: > { %s504_s12 = sadd.s32 4294967295, %s544_s11   ;;  %p508_p0 = scmp.ge.s32.totalorder %s544_s11, 1  ;;  %s544_s11 = sphi %s601_s11, %s20_s11  }
   0x3   : > { %p288_p1 = scmp.lt.s32.totalorder %s544_s11, 3 }
   0x5   : > { %p289_p2 = pnand %p508_p0, %p288_p1 }
   0x6   : > { %p324_p3 = scmp.lt.s32.totalorder (!%p289_p2), %s504_s12, 1  ;;  %s361_s18 = sld [smem:[#allocation2]] (!%p289_p2) }
   0x7   : > { %292 = sbr.rel (%p289_p2) target bundleno = 1071 (0x42f), region = 56 }
   0xc   : > { %v335_v0 = vld [vmem:[%s660_s1] sm:$0xf]  ;;  %v546_v1 = vmov 0   ;;  %s670_s12 = smov (!%p324_p3, %s504_s12), 1  ;;  %vm346_vm0 = vcmask 1043456   ;;  %v362_v19 = vstv %s361_s18  ;;  %vm394_vm1 = vcmask 11264  }
   0xd   : > { %527 = vset.pattern.permute.xlu0 %v546_v1  ;;  %528 = vset.pattern.permute.xlu1 %v546_v1  ;;  %s515_s2 = sshll.u32 %s670_s12, 3  ;;  %v392_v41 = vld [vmem:[%s662_s3] sm:$0xf]  ;;  %vm404_vm2 = vcmask 8192   ;;  %v425_v63 = vlaneseq }
   0xe   : > { %338 = vperm.xlu0 %527, %v335_v0   ;;  %s328_s17 = scalar_lea.vmem %s659_s0, %s515_s2  ;;  %v402_v51 = vld [vmem:[%s663_s4] sm:$0x1]  ;;  %s333_s14 = scalar_lea.vmem %s668_s9, %s515_s2 }
   0xf   : > { %v620_v2 = vld [vmem:[%s328_s17] sm:$0xff] }
  0x10   : > { %v342_v3 = vcombine.high %v620_v2, %v620_v2  ;;  %v419_v1 = vld [vmem:[%s664_s5] sm:$0x1] }
  0x89   : > { %v339_v4 = vpop.permute.xlu0 %338 }
  0x8a   : > { %v344_v5 = vmul.f32 %v339_v4, %v620_v2  ;;  %v345_v6 = vmul.f32 %v342_v3, %v339_v4  ;;  %v426_v4 = vshrl.u32 %v425_v63, 7 }
  0x8c   : > { %v347_v7 = vsel %vm346_vm0, %v344_v5, 0.0  ;;  %v354_v8 = vsel %vm346_vm0, %v345_v6, 0.0  ;;  %v421_v5 = vld [vmem:[%s665_s6] sm:$0x1] }
  0x8d   : > { %v348_v9 = vrot.slane %v347_v7, 4  ;;  %v355_v10 = vrot.slane %v354_v8, 4 }
  0x8f   : > { %v349_v11 = vadd.f32 %v348_v9, %v347_v7  ;;  %v356_v12 = vadd.f32 %v355_v10, %v354_v8  ;;  %v427_v8 = vsub.s32 0, %v426_v4  ;;  %v424_v10 = vld [vmem:[%s666_s7] sm:$0xf] }
  0x91   : > { %v350_v13 = vrot.slane %v349_v11, 2  ;;  %v357_v14 = vrot.slane %v356_v12, 2 }
  0x93   : > { %v351_v15 = vadd.f32 %v350_v13, %v349_v11  ;;  %v358_v16 = vadd.f32 %v357_v14, %v356_v12  ;;  %v433_v14 = vld [vmem:[%s667_s8] sm:$0xf] }
  0x95   : > { %v352_v17 = vrot.slane %v351_v15, 1  ;;  %v359_v18 = vrot.slane %v358_v16, 1 }
  0x97   : > { %v353_v20 = vadd.f32 %v352_v17, %v351_v15  ;;  %v360_v21 = vadd.f32 %v359_v18, %v358_v16  ;;  %v547_v17 = vmov 839922192  }
  0x98   : > { %v440_v18 = vunpack.c.l.s4 %v547_v17 }
  0x99   : > { %v363_v22 = vadd.f32 %v362_v19, %v353_v20  ;;  %v364_v23 = vadd.f32 %v362_v19, %v360_v21 }
  0x9a   : > { %v441_v19 = vunpack.c.0.s8 %v440_v18 }
  0x9b   : > { %v365_v24 = vmax.f32 %v363_v22, %v364_v23 }
  0x9c   : > { %v444_v20 = vsub.s32 %v441_v19, %v426_v4 }
  0x9d   : > { %366 = vmax.xlane.f32.xlu0 %v365_v24 }
 0x126   : > { %v367_v25 = vpop.xlane.xlu0 %366 }
 0x127   : > { %v368_v26 = vsub.f32 %v363_v22, %v367_v25  ;;  %v369_v27 = vsub.f32 %v364_v23, %v367_v25 }
 0x129   : > { %v370_v28 = vmul.f32 1.442695, %v368_v26  ;;  %v372_v29 = vmul.f32 1.442695, %v369_v27 }
 0x12b   : > { %530 = vpow2.f32 %v370_v28 }
 0x12c   : > { %532 = vpow2.f32 %v372_v29 }
 0x138   : > { %v531_v30 = vpop.eup %530 }
 0x139   : > { %v533_v31 = vpop.eup %532 }
 0x13a   : > { %v374_v32 = vadd.f32 %v533_v31, %v531_v30  ;;  %v379_v33 = vcombine.low %v531_v30, %v533_v31 }
 0x13c   : > { %375 = vadd.xlane.f32.xlu1 %v374_v32  ;;  %v381_v34 = vmul.f32 %v379_v33, %v620_v2 }
 0x13e   : > { %v383_v35 = vcombine.high %v381_v34, %v381_v34  ;;  %v385_v36 = vsel %vm346_vm0, %v381_v34, 0.0 }
 0x140   : > { %v386_v37 = vsel %vm346_vm0, %v383_v35, 0.0 }
 0x141   : > { %v387_v38 = vadd.f32 %v386_v37, %v385_v36 }
 0x143   : > { %388 = vadd.xlane.f32.xlu1 %v387_v38 }
 0x1c5   : > { %v376_v39 = vpop.xlane.xlu1 %375 }
 0x1c6   : > { %534 = vrcp.f32 %v376_v39 }
 0x1cc   : > { %v389_v42 = vpop.xlane.xlu1 %388 }
 0x1d3   : > { %v535_v40 = vpop.eup %534 }
 0x1d4   : > { %v391_v43 = vmul.f32 %v535_v40, %v389_v42 }
 0x1d6   : > { %v393_v44 = vmul.f32 %v392_v41, %v391_v43 }
 0x1d8   : > { %v395_v45 = vsel %vm394_vm1, %v393_v44, 0.0 }
 0x1d9   : > { %v396_v46 = vrot.slane %v395_v45, 4 }
 0x1db   : > { %v397_v47 = vadd.f32 %v396_v46, %v395_v45 }
 0x1dd   : > { %v398_v48 = vrot.slane %v397_v47, 2 }
 0x1df   : > { %v399_v49 = vadd.f32 %v398_v48, %v397_v47 }
 0x1e1   : > { %v400_v50 = vrot.slane %v399_v49, 1 }
 0x1e3   : > { %v401_v52 = vadd.f32 %v400_v50, %v399_v49 }
 0x1e5   : > { %v403_v53 = vadd.f32 %v402_v51, %v401_v52 }
 0x1e7   : > { %v405_v54 = vsel %vm404_vm2, %v403_v53, 0.0 }
 0x1e8   : > { %406 = vadd.xlane.f32.xlu1 %v405_v54 }
 0x271   : > { %v407_v55 = vpop.xlane.xlu1 %406 }
 0x272   : > { %v409_v56 = vmul.f32 0.5, %v407_v55 }
 0x274   : > { %v410_v57 = vsub.f32 %v403_v53, %v409_v56 }
 0x276   : > { %v411_v58 = vmul.f32 %v410_v57, %v410_v57 }
 0x278   : > { %v412_v59 = vsel %vm404_vm2, %v411_v58, 0.0 }
 0x279   : > { %413 = vadd.xlane.f32.xlu1 %v412_v59 }
 0x302   : > { %v414_v60 = vpop.xlane.xlu1 %413 }
 0x303   : > { %v415_v61 = vmul.f32 0.5, %v414_v60 }
 0x305   : > { %v416_v62 = vadd.f32 1e-05, %v415_v61 }
 0x307   : > { %536 = vrsqrt.f32 %v416_v62 }
 0x314   : > { %v537_v0 = vpop.eup %536 }
 0x315   : > { %v418_v3 = vmul.f32 %v537_v0, %v410_v57 }
 0x317   : > { %v420_v6 = vmul.f32 %v419_v1, %v418_v3 }
 0x319   : > { %v422_v7 = vadd.f32 %v421_v5, %v420_v6 }
 0x31b   : > { %v423_v9 = vmax.f32 %v422_v7, 0.0 }
 0x31d   : > { %v428_v11 = vrot.slane %v423_v9, %v427_v8 }
 0x31f   : > { %v429_v12 = vmul.f32 %v428_v11, %v424_v10 }
 0x321   : > { %v430_v13 = vsel %vm394_vm1, %v429_v12, 0.0 }
 0x322   : > { %431 = vadd.xlane.f32.xlu1 %v430_v13 }
 0x3ab   : > { %v432_v15 = vpop.xlane.xlu1 %431 }
 0x3ac   : > { %v434_v16 = vadd.f32 %v433_v14, %v432_v15 }
 0x3ae   : > { %437 = vperm.xlu1 %528, %v434_v16  }
 0x429   : > { %v438_v21 = vpop.permute.xlu1 %437 }
 0x42a   : > { %v445_v22 = vrot.slane %v438_v21, %v444_v20 }
 0x42c   : > { %v447_v23 = vadd.f32 %v445_v22, %v620_v2 }
 0x42e   : > { %448 = vst [vmem:[%s333_s14] sm:$0xff] %v447_v23 }
 0x42f PF: > { %s20_s11 = sadd.s32 1, %s544_s11  }
 0x430   : > { %p17_p4 = scmp.ge.s32.totalorder %s20_s11, 4  }
 0x432   :  { %19 = sbr.rel (!%p17_p4) target bundleno = 2 (0x2), region = 86 }

</bundles_post_ra>
